<compile_context>
chip_gen: v5e
topology: v5e:2x2
jax: 0.10.0
libtpu: 0.0.40
codegen_flags: <defaults>
</compile_context>

<pallas_src>
from functools import partial

import jax
import jax.numpy as jnp
from jax import lax
from jax.experimental import pallas as pl
from jax.experimental.pallas import tpu as pltpu

LANE = 128  # TPU lane width; padding target for both node and channel dims
NUM_LAYERS = 3


def _round_up(n: int, m: int) -> int:
    return ((n + m - 1) // m) * m


# ----------------------------- Pallas kernel ------------------------------ #
def fused_gcn3_kernel(a_ref, x_ref, w_ref, b_ref, o_ref):
    """Three fused GCN layers: h <- relu(Â @ (h @ W_i) + b_i), i = 0..2.

    a_ref: [Np, Np] bf16 (pre-cast, lane-dense)
    x_ref: [Np, cp] f32
    w_ref: [3, cp, cp] bf16 (pre-cast, stacked)
    b_ref: [3, 1, cp] f32 (stacked)
    o_ref: [Np, cp] f32

    Everything is VMEM-resident; layer intermediates never touch HBM.  MXU
    sees bf16 operands and accumulates in f32; bias + ReLU run in f32 (VPU).
    """
    a = a_ref[...]          # bf16 [Np, Np], loaded once, reused for 3 layers
    h = x_ref[...]          # f32  [Np, cp]

    for i in range(NUM_LAYERS):  # static unroll
        # feature transform: [Np, cp] @ [cp, cp]   (MXU, bf16 in / f32 acc)
        t = jnp.dot(h.astype(jnp.bfloat16), w_ref[i],
                    preferred_element_type=jnp.float32)
        # neighbor aggregation: [Np, Np] @ [Np, cp] (MXU, bf16 in / f32 acc)
        agg = jnp.dot(a, t.astype(jnp.bfloat16),
                      preferred_element_type=jnp.float32)
        # bias + ReLU in f32 (VPU)
        h = jnp.maximum(agg + b_ref[i], 0.0)

    o_ref[...] = h.astype(o_ref.dtype)


def fused_gcn3(a_hat_bf16, x_padded, w_stack, b_stack):
    """One pallas_call running all three GCN layers on VMEM-resident data."""
    np_ = a_hat_bf16.shape[0]
    cp = x_padded.shape[1]

    vmem_spec = pl.BlockSpec(memory_space=pltpu.MemorySpace.VMEM)
    flops = NUM_LAYERS * (2 * np_ * cp * cp + 2 * np_ * np_ * cp)
    bytes_accessed = (2 * np_ * np_                      # Â (bf16)
                      + 4 * np_ * cp                     # x (f32)
                      + 2 * NUM_LAYERS * cp * cp         # weights (bf16)
                      + 4 * NUM_LAYERS * cp              # biases (f32)
                      + 4 * np_ * cp)                    # output (f32)

    return pl.pallas_call(
        fused_gcn3_kernel,
        out_shape=jax.ShapeDtypeStruct((np_, cp), jnp.float32),
        in_specs=[vmem_spec] * 4,
        out_specs=vmem_spec,
        compiler_params=pltpu.CompilerParams(vmem_limit_bytes=32 * 1024 * 1024),
        cost_estimate=pl.CostEstimate(flops=flops, transcendentals=0,
                                      bytes_accessed=bytes_accessed),
    )(a_hat_bf16, x_padded, w_stack, b_stack)


# ------------------------------ JAX glue ---------------------------------- #
def build_norm_adj(edge_index, num_nodes, edge_weight=None):
    """Dense symmetric-normalized adjacency with self loops: D^-1/2 (A+I) D^-1/2.

    Graph-static: compute once per graph and reuse across forward passes.
    Duplicate edges accumulate (matches PyG gcn_norm scatter-add semantics).
    """
    src = edge_index[0]
    dst = edge_index[1]
    if edge_weight is None:
        edge_weight = jnp.ones(src.shape[0], dtype=jnp.float32)
    a = jnp.zeros((num_nodes, num_nodes), dtype=jnp.float32)
    # messages flow source -> target: row = target, col = source
    a = a.at[dst, src].add(edge_weight)
    a = a + jnp.eye(num_nodes, dtype=jnp.float32)  # self loops (real nodes only)
    deg = a.sum(axis=1)
    d_inv_sqrt = jnp.where(deg > 0, lax.rsqrt(deg), 0.0)
    return a * d_inv_sqrt[:, None] * d_inv_sqrt[None, :]


def init_params(key, in_c, hidden_c, out_c):
    """Deterministic Glorot-ish init for the 3 GCNConv layers (bias = 0)."""
    dims = [(in_c, hidden_c), (hidden_c, hidden_c), (hidden_c, out_c)]
    params = []
    for i, (ci, co) in enumerate(dims):
        k = jax.random.fold_in(key, i)
        scale = jnp.sqrt(2.0 / (ci + co)).astype(jnp.float32)
        w = jax.random.normal(k, (ci, co), dtype=jnp.float32) * scale
        b = jnp.zeros((co,), dtype=jnp.float32)
        params.append((w, b))
    return params


def prepare_static(edge_index, num_nodes, params, edge_weight=None):
    """One-time per-graph preprocessing of all static kernel operands.

    Returns:
      a_hat_p : [Np, Np]   bf16, lane-dense, phantom rows/cols exactly zero
      w_stack : [3, cp, cp] bf16, zero-padded stacked weights
      b_stack : [3, 1, cp]  f32,  zero-padded stacked biases
    """
    np_ = _round_up(num_nodes, LANE)
    a = build_norm_adj(edge_index, num_nodes, edge_weight)
    a_hat_p = (jnp.zeros((np_, np_), dtype=jnp.float32)
               .at[:num_nodes, :num_nodes].set(a)
               .astype(jnp.bfloat16))

    cp = _round_up(max(params[0][0].shape[0],
                       max(w.shape[1] for w, _ in params)), LANE)
    w_stack = jnp.zeros((NUM_LAYERS, cp, cp), dtype=jnp.float32)
    b_stack = jnp.zeros((NUM_LAYERS, 1, cp), dtype=jnp.float32)
    for i, (w, b) in enumerate(params):
        ci, co = w.shape
        w_stack = w_stack.at[i, :ci, :co].set(w)
        b_stack = b_stack.at[i, 0, :co].set(b)
    return a_hat_p, w_stack.astype(jnp.bfloat16), b_stack


@partial(jax.jit, static_argnames=("out_c",))
def diffpool_gcn_apply(a_hat_p, x, w_stack, b_stack, out_c):
    """Forward pass given the precomputed/padded static operands."""
    n, in_c = x.shape
    np_ = a_hat_p.shape[0]
    cp = w_stack.shape[1]
    x_p = jnp.zeros((np_, cp), dtype=jnp.float32).at[:n, :in_c].set(x)
    out_p = fused_gcn3(a_hat_p, x_p, w_stack, b_stack)   # [Np, cp], lane-dense
    return out_p[:n, :out_c]


def diffpool_gcn_forward(x, edge_index, params, edge_weight=None):
    """Full-module parity: builds Â from edge_index, then runs the fused kernel."""
    n = x.shape[0]
    out_c = params[-1][0].shape[1]
    a_hat_p, w_stack, b_stack = prepare_static(edge_index, n, params, edge_weight)
    return diffpool_gcn_apply(a_hat_p, x, w_stack, b_stack, out_c)


# ------------------------------- main -------------------------------------- #
if __name__ == "__main__":
    key = jax.random.PRNGKey(0)
    N, E = 64, 256
    IN_C, HIDDEN_C, OUT_C = 16, 32, 32

    k_x, k_e, k_p = jax.random.split(key, 3)
    x = jax.random.normal(k_x, (N, IN_C), dtype=jnp.float32)
    edge_index = jax.random.randint(k_e, (2, E), 0, N, dtype=jnp.int32)
    params = init_params(k_p, IN_C, HIDDEN_C, OUT_C)

    # Static-graph path: build/pad/cast Â and the weight stack once, reuse.
    a_hat_p, w_stack, b_stack = prepare_static(edge_index, N, params)

    out = diffpool_gcn_apply(a_hat_p, x, w_stack, b_stack, OUT_C)
    out = jax.block_until_ready(out)

    assert out.shape == (N, OUT_C)
    assert bool(jnp.all(out >= 0.0))  # ReLU output
    print("KERNEL_OK")
</pallas_src>

<mosaic_0001>
module attributes {stable_mosaic.version = 11 : i64} {
  func.func @fused_gcn3_kernel(%arg0: memref<128x128xbf16, #tpu.memory_space<vmem>>, %arg1: memref<128x128xf32, #tpu.memory_space<vmem>>, %arg2: memref<3x128x128xbf16, #tpu.memory_space<vmem>>, %arg3: memref<3x1x128xf32, #tpu.memory_space<vmem>>, %arg4: memref<128x128xf32, #tpu.memory_space<vmem>>) attributes {dimension_semantics = [], scalar_prefetch = 0 : i64, scratch_operands = 0 : i64, tpu.core_type = #tpu.core_type<tc>} {
    %c0 = arith.constant 0 : index
    %c0_0 = arith.constant 0 : index
    %0 = vector.load %arg0[%c0, %c0_0] : memref<128x128xbf16, #tpu.memory_space<vmem>>, vector<128x128xbf16>
    %c0_1 = arith.constant 0 : index
    %c0_2 = arith.constant 0 : index
    %1 = vector.load %arg1[%c0_1, %c0_2] : memref<128x128xf32, #tpu.memory_space<vmem>>, vector<128x128xf32>
    %2 = arith.truncf %1 : vector<128x128xf32> to vector<128x128xbf16>
    %c0_3 = arith.constant 0 : index
    %c0_4 = arith.constant 0 : index
    %c0_5 = arith.constant 0 : index
    %3 = vector.load %arg2[%c0_3, %c0_4, %c0_5] : memref<3x128x128xbf16, #tpu.memory_space<vmem>>, vector<1x128x128xbf16>
    %4 = vector.shape_cast %3 : vector<1x128x128xbf16> to vector<128x128xbf16>
    %cst = arith.constant dense<0.000000e+00> : vector<128x128xf32>
    %5 = tpu.matmul %2, %4, %cst {dimension_numbers = #tpu.dot_dimension_numbers<[1], [0], [0], [1], [0, 0, 1, 1], [], []>} : vector<128x128xbf16>, vector<128x128xbf16>, vector<128x128xf32> -> vector<128x128xf32>
    %6 = arith.truncf %5 : vector<128x128xf32> to vector<128x128xbf16>
    %cst_6 = arith.constant dense<0.000000e+00> : vector<128x128xf32>
    %7 = tpu.matmul %0, %6, %cst_6 {dimension_numbers = #tpu.dot_dimension_numbers<[1], [0], [0], [1], [0, 0, 1, 1], [], []>} : vector<128x128xbf16>, vector<128x128xbf16>, vector<128x128xf32> -> vector<128x128xf32>
    %c0_7 = arith.constant 0 : index
    %c0_8 = arith.constant 0 : index
    %c0_9 = arith.constant 0 : index
    %8 = vector.load %arg3[%c0_7, %c0_8, %c0_9] : memref<3x1x128xf32, #tpu.memory_space<vmem>>, vector<1x1x128xf32>
    %9 = vector.shape_cast %8 : vector<1x1x128xf32> to vector<1x128xf32>
    %10 = vector.broadcast %9 : vector<1x128xf32> to vector<128x128xf32>
    %11 = arith.addf %7, %10 : vector<128x128xf32>
    %cst_10 = arith.constant 0.000000e+00 : f32
    %12 = vector.broadcast %cst_10 : f32 to vector<128x128xf32>
    %13 = arith.maximumf %11, %12 : vector<128x128xf32>
    %14 = arith.truncf %13 : vector<128x128xf32> to vector<128x128xbf16>
    %c1 = arith.constant 1 : index
    %c0_11 = arith.constant 0 : index
    %c0_12 = arith.constant 0 : index
    %15 = vector.load %arg2[%c1, %c0_11, %c0_12] : memref<3x128x128xbf16, #tpu.memory_space<vmem>>, vector<1x128x128xbf16>
    %16 = vector.shape_cast %15 : vector<1x128x128xbf16> to vector<128x128xbf16>
    %cst_13 = arith.constant dense<0.000000e+00> : vector<128x128xf32>
    %17 = tpu.matmul %14, %16, %cst_13 {dimension_numbers = #tpu.dot_dimension_numbers<[1], [0], [0], [1], [0, 0, 1, 1], [], []>} : vector<128x128xbf16>, vector<128x128xbf16>, vector<128x128xf32> -> vector<128x128xf32>
    %18 = arith.truncf %17 : vector<128x128xf32> to vector<128x128xbf16>
    %cst_14 = arith.constant dense<0.000000e+00> : vector<128x128xf32>
    %19 = tpu.matmul %0, %18, %cst_14 {dimension_numbers = #tpu.dot_dimension_numbers<[1], [0], [0], [1], [0, 0, 1, 1], [], []>} : vector<128x128xbf16>, vector<128x128xbf16>, vector<128x128xf32> -> vector<128x128xf32>
    %c1_15 = arith.constant 1 : index
    %c0_16 = arith.constant 0 : index
    %c0_17 = arith.constant 0 : index
    %20 = vector.load %arg3[%c1_15, %c0_16, %c0_17] : memref<3x1x128xf32, #tpu.memory_space<vmem>>, vector<1x1x128xf32>
    %21 = vector.shape_cast %20 : vector<1x1x128xf32> to vector<1x128xf32>
    %22 = vector.broadcast %21 : vector<1x128xf32> to vector<128x128xf32>
    %23 = arith.addf %19, %22 : vector<128x128xf32>
    %cst_18 = arith.constant 0.000000e+00 : f32
    %24 = vector.broadcast %cst_18 : f32 to vector<128x128xf32>
    %25 = arith.maximumf %23, %24 : vector<128x128xf32>
    %26 = arith.truncf %25 : vector<128x128xf32> to vector<128x128xbf16>
    %c2 = arith.constant 2 : index
    %c0_19 = arith.constant 0 : index
    %c0_20 = arith.constant 0 : index
    %27 = vector.load %arg2[%c2, %c0_19, %c0_20] : memref<3x128x128xbf16, #tpu.memory_space<vmem>>, vector<1x128x128xbf16>
    %28 = vector.shape_cast %27 : vector<1x128x128xbf16> to vector<128x128xbf16>
    %cst_21 = arith.constant dense<0.000000e+00> : vector<128x128xf32>
    %29 = tpu.matmul %26, %28, %cst_21 {dimension_numbers = #tpu.dot_dimension_numbers<[1], [0], [0], [1], [0, 0, 1, 1], [], []>} : vector<128x128xbf16>, vector<128x128xbf16>, vector<128x128xf32> -> vector<128x128xf32>
    %30 = arith.truncf %29 : vector<128x128xf32> to vector<128x128xbf16>
    %cst_22 = arith.constant dense<0.000000e+00> : vector<128x128xf32>
    %31 = tpu.matmul %0, %30, %cst_22 {dimension_numbers = #tpu.dot_dimension_numbers<[1], [0], [0], [1], [0, 0, 1, 1], [], []>} : vector<128x128xbf16>, vector<128x128xbf16>, vector<128x128xf32> -> vector<128x128xf32>
    %c2_23 = arith.constant 2 : index
    %c0_24 = arith.constant 0 : index
    %c0_25 = arith.constant 0 : index
    %32 = vector.load %arg3[%c2_23, %c0_24, %c0_25] : memref<3x1x128xf32, #tpu.memory_space<vmem>>, vector<1x1x128xf32>
    %33 = vector.shape_cast %32 : vector<1x1x128xf32> to vector<1x128xf32>
    %34 = vector.broadcast %33 : vector<1x128xf32> to vector<128x128xf32>
    %35 = arith.addf %31, %34 : vector<128x128xf32>
    %cst_26 = arith.constant 0.000000e+00 : f32
    %36 = vector.broadcast %cst_26 : f32 to vector<128x128xf32>
    %37 = arith.maximumf %35, %36 : vector<128x128xf32>
    %c0_27 = arith.constant 0 : index
    %c0_28 = arith.constant 0 : index
    %38 = vector.load %arg4[%c0_27, %c0_28] : memref<128x128xf32, #tpu.memory_space<vmem>>, vector<128x128xf32>
    tpu.vector_store %arg4[%c0_27, %c0_28], %37 {strides = array<i32>} : memref<128x128xf32, #tpu.memory_space<vmem>>, vector<128x128xf32>,
    return
  }
}

</mosaic_0001>

<bundles_post_ra>
// kernel: diffpool_gcn_apply.1
= control target key start
LH: loop header
LB: loop body
LE: loop exit
PB: predicated region body
PF: predicated region fallthrough
CT: control target
= control target key end

     0   :  { %s1212_s2 = inlined_call_operand.vmem [shape: bf16[3,128,128], index: 2, kind: input, shape index: {}]   ;;  %s1213_s1 = inlined_call_operand.vmem [shape: f32[128,128], index: 1, kind: input, shape index: {}]   ;;  %s1214_s3 = inlined_call_operand.vmem [shape: f32[3,1,128], index: 3, kind: input, shape index: {}]   ;;  %s1215_s0 = inlined_call_operand.vmem [shape: bf16[128,128], index: 0, kind: input, shape index: {}]   ;;  %s1216_s4 = inlined_call_operand.vmem [shape: f32[128,128], index: 4, kind: output, shape index: {}]  }
   0x1   :  { %v892_v0 = vld [vmem:[%s1212_s2 + $0x38] sm:$0xff]  ;;  %v891_v1 = vld [vmem:[%s1212_s2 + $0x30] sm:$0xff]  ;;  %v890_v2 = vld [vmem:[%s1212_s2 + $0x28] sm:$0xff] }
   0x2   :  { %909 = vmatpush.bf16.msra.mxu2 %v892_v0  ;;  %121 = vmatpush.bf16.msra.mxu0 %v892_v0  ;;  %v889_v3 = vld [vmem:[%s1212_s2 + $0x20] sm:$0xff]  ;;  %v888_v4 = vld [vmem:[%s1212_s2 + $0x18] sm:$0xff]  ;;  %v887_v5 = vld [vmem:[%s1212_s2 + $0x10] sm:$0xff] }
   0x3   :  { %v886_v6 = vld [vmem:[%s1212_s2 + $0x8] sm:$0xff]  ;;  %v885_v7 = vld [vmem:[%s1212_s2] sm:$0xff]  ;;  %v43_v14 = vld [vmem:[%s1213_s1 + $0x50] sm:$0xff] }
   0x4   :  { %v41_v8 = vld [vmem:[%s1213_s1 + $0x40] sm:$0xff]  ;;  %v42_v9 = vld [vmem:[%s1213_s1 + $0x48] sm:$0xff]  ;;  %v44_v15 = vld [vmem:[%s1213_s1 + $0x58] sm:$0xff] }
   0x5   :  { %v33_v10 = vld [vmem:[%s1213_s1] sm:$0xff]  ;;  %v34_v11 = vld [vmem:[%s1213_s1 + $0x8] sm:$0xff]  ;;  %v53_v12 = vpack.c.bf16 %v42_v9, %v41_v8  ;;  %v35_v16 = vld [vmem:[%s1213_s1 + $0x10] sm:$0xff]  ;;  %v54_v18 = vpack.c.bf16 %v44_v15, %v43_v14 }
   0x6   :  { %910 = vmatpush.bf16.msra.mxu2 %v891_v1  ;;  %122 = vmatpush.bf16.msra.mxu0 %v891_v1  ;;  %v49_v13 = vpack.c.bf16 %v34_v11, %v33_v10  ;;  %v36_v17 = vld [vmem:[%s1213_s1 + $0x18] sm:$0xff]  ;;  %v45_v20 = vld [vmem:[%s1213_s1 + $0x60] sm:$0xff]  ;;  %v46_v21 = vld [vmem:[%s1213_s1 + $0x68] sm:$0xff] }
   0x7   :  { %v50_v19 = vpack.c.bf16 %v36_v17, %v35_v16  ;;  %v37_v22 = vld [vmem:[%s1213_s1 + $0x20] sm:$0xff]  ;;  %v38_v23 = vld [vmem:[%s1213_s1 + $0x28] sm:$0xff]  ;;  %v55_v24 = vpack.c.bf16 %v46_v21, %v45_v20  ;;  %v47_v26 = vld [vmem:[%s1213_s1 + $0x70] sm:$0xff] }
   0x8   :  { %v51_v25 = vpack.c.bf16 %v38_v23, %v37_v22  ;;  %v48_v27 = vld [vmem:[%s1213_s1 + $0x78] sm:$0xff]  ;;  %v39_v28 = vld [vmem:[%s1213_s1 + $0x30] sm:$0xff]  ;;  %v1028_v56 = vld [vmem:[%s1215_s0] sm:$0xff] }
   0x9   :  { %v40_v29 = vld [vmem:[%s1213_s1 + $0x38] sm:$0xff]  ;;  %v56_v30 = vpack.c.bf16 %v48_v27, %v47_v26  ;;  %v1034_v57 = vld [vmem:[%s1215_s0 + $0x8] sm:$0xff]  ;;  %v1040_v58 = vld [vmem:[%s1215_s0 + $0x20] sm:$0xff] }
   0xa   :  { %911 = vmatpush.bf16.msra.mxu2 %v890_v2  ;;  %123 = vmatpush.bf16.msra.mxu0 %v890_v2  ;;  %v52_v31 = vpack.c.bf16 %v40_v29, %v39_v28  ;;  %v1046_v59 = vld [vmem:[%s1215_s0 + $0x10] sm:$0xff]  ;;  %v1051_v60 = vld [vmem:[%s1215_s0 + $0x28] sm:$0xff]  ;;  %v900_v61 = vld [vmem:[%s1212_s2 + $0x78] sm:$0xff] }
   0xb   :  { %v899_v62 = vld [vmem:[%s1212_s2 + $0x70] sm:$0xff]  ;;  %v898_v63 = vld [vmem:[%s1212_s2 + $0x68] sm:$0xff]  ;;  %v1067_v0 = vld [vmem:[%s1215_s0 + $0x18] sm:$0xff] }
   0xc   :  { %v897_v1 = vld [vmem:[%s1212_s2 + $0x60] sm:$0xff]  ;;  %v1075_v2 = vld [vmem:[%s1215_s0 + $0x30] sm:$0xff] }
   0xd   :  { %v925_v9 = vld [vmem:[%s1214_s3] ss:$0 sm:$0xff] }
   0xe   :  { %912 = vmatpush.bf16.msra.mxu2 %v889_v3  ;;  %124 = vmatpush.bf16.msra.mxu0 %v889_v3  ;;  %v1082_v3 = vld [vmem:[%s1215_s0 + $0x38] sm:$0xff] }
  0x12   :  { %913 = vmatpush.bf16.msra.mxu2 %v888_v4  ;;  %125 = vmatpush.bf16.msra.mxu0 %v888_v4  ;;  %v896_v4 = vld [vmem:[%s1212_s2 + $0x58] sm:$0xff] }
  0x16   :  { %914 = vmatpush.bf16.msra.mxu2 %v887_v5  ;;  %126 = vmatpush.bf16.msra.mxu0 %v887_v5  ;;  %v895_v5 = vld [vmem:[%s1212_s2 + $0x50] sm:$0xff] }
  0x1a   :  { %915 = vmatpush.bf16.msra.mxu2 %v886_v6  ;;  %127 = vmatpush.bf16.msra.mxu0 %v886_v6  ;;  %v894_v6 = vld [vmem:[%s1212_s2 + $0x48] sm:$0xff] }
  0x1e   :  { %916 = vmatpush.bf16.msra.mxu2 %v885_v7  ;;  %128 = vmatpush.bf16.msra.mxu0 %v885_v7  ;;  %v893_v7 = vld [vmem:[%s1212_s2 + $0x40] sm:$0xff] }
  0x21   :  { %149 = vmatmul.bf16.vlgmr.msra.gmra.mxu2 %v53_v12  ;;  %129 = vmatmul.bf16.vlgmr.msra.gmra.mxu0 %v49_v13 }
  0x22   :  { %368 = vmatpush.bf16.msrb.mxu2 %v900_v61 }
  0x26   :  { %369 = vmatpush.bf16.msrb.mxu2 %v899_v62 }
  0x2a   :  { %370 = vmatpush.bf16.msrb.mxu2 %v898_v63 }
  0x2e   :  { %371 = vmatpush.bf16.msrb.mxu2 %v897_v1 }
  0x31   :  { %154 = vmatmul.bf16.gmra.mxu2 %v54_v18  ;;  %134 = vmatmul.bf16.gmra.mxu0 %v50_v19 }
  0x32   :  { %372 = vmatpush.bf16.msrb.mxu2 %v896_v4 }
  0x36   :  { %373 = vmatpush.bf16.msrb.mxu2 %v895_v5 }
  0x3a   :  { %374 = vmatpush.bf16.msrb.mxu2 %v894_v6 }
  0x3e   :  { %375 = vmatpush.bf16.msrb.mxu2 %v893_v7 }
  0x41   :  { %159 = vmatmul.bf16.gmra.mxu2 %v55_v24  ;;  %139 = vmatmul.bf16.gmra.mxu0 %v51_v25 }
  0x51   :  { %164 = vmatmul.bf16.gmra.mxu2 %v56_v30  ;;  %144 = vmatmul.bf16.gmra.mxu0 %v52_v31 }
  0x9e   :  { %v130_v33 = vpop.f32.mrf.mxu0 }
  0xa4   :  { %v150_v32 = vpop.f32.mrf.mxu2 }
  0xa6   :  { %v132_v35 = vpop.f32.mrf.mxu0 }
  0xa7   :  { %v170_v55 = vpack.c.bf16 %v132_v35, %v130_v33 }
  0xac   :  { %v152_v34 = vpop.f32.mrf.mxu2 }
  0xad   :  { %v174_v50 = vpack.c.bf16 %v152_v34, %v150_v32 }
  0xae   :  { %v135_v37 = vpop.f32.mrf.mxu0 }
  0xb4   :  { %v155_v36 = vpop.f32.mrf.mxu2 }
  0xb6   :  { %v137_v39 = vpop.f32.mrf.mxu0 }
  0xb7   :  { %v171_v54 = vpack.c.bf16 %v137_v39, %v135_v37 }
  0xbc   :  { %v157_v38 = vpop.f32.mrf.mxu2 }
  0xbd   :  { %v175_v49 = vpack.c.bf16 %v157_v38, %v155_v36 }
  0xbe   :  { %v140_v41 = vpop.f32.mrf.mxu0 }
  0xc4   :  { %v160_v40 = vpop.f32.mrf.mxu2 }
  0xc6   :  { %v142_v44 = vpop.f32.mrf.mxu0 }
  0xc7   :  { %v172_v53 = vpack.c.bf16 %v142_v44, %v140_v41 }
  0xcc   :  { %v162_v42 = vpop.f32.mrf.mxu2 }
  0xcd   :  { %v176_v48 = vpack.c.bf16 %v162_v42, %v160_v40 }
  0xce   :  { %v145_v47 = vpop.f32.mrf.mxu0 }
  0xd4   :  { %v165_v43 = vpop.f32.mrf.mxu2 }
  0xd6   :  { %v147_v51 = vpop.f32.mrf.mxu0 }
  0xd7   :  { %v173_v52 = vpack.c.bf16 %v147_v51, %v145_v47 }
  0xdc   :  { %v167_v45 = vpop.f32.mrf.mxu2 }
  0xdd   :  { %v177_v46 = vpack.c.bf16 %v167_v45, %v165_v43 }
  0xdf   :  { %230 = vmatpush.bf16.msra.mxu1 %v177_v46  ;;  %917 = vmatpush.bf16.msra.mxu3 %v177_v46 }
  0xe3   :  { %231 = vmatpush.bf16.msra.mxu1 %v176_v48  ;;  %918 = vmatpush.bf16.msra.mxu3 %v176_v48 }
  0xe7   :  { %232 = vmatpush.bf16.msra.mxu1 %v175_v49  ;;  %919 = vmatpush.bf16.msra.mxu3 %v175_v49 }
  0xeb   :  { %233 = vmatpush.bf16.msra.mxu1 %v174_v50  ;;  %920 = vmatpush.bf16.msra.mxu3 %v174_v50 }
  0xef   :  { %234 = vmatpush.bf16.msra.mxu1 %v173_v52  ;;  %921 = vmatpush.bf16.msra.mxu3 %v173_v52 }
  0xf3   :  { %235 = vmatpush.bf16.msra.mxu1 %v172_v53  ;;  %922 = vmatpush.bf16.msra.mxu3 %v172_v53 }
  0xf7   :  { %236 = vmatpush.bf16.msra.mxu1 %v171_v54  ;;  %923 = vmatpush.bf16.msra.mxu3 %v171_v54 }
  0xfb   :  { %237 = vmatpush.bf16.msra.mxu1 %v170_v55  ;;  %924 = vmatpush.bf16.msra.mxu3 %v170_v55 }
  0xfe   :  { %238 = vmatmul.bf16.vlgmr.msra.gmra.mxu1 %v1028_v56  ;;  %258 = vmatmul.bf16.vlgmr.msra.gmra.mxu3 %v1040_v58 }
 0x10e   :  { %243 = vmatmul.bf16.gmra.mxu1 %v1034_v57  ;;  %263 = vmatmul.bf16.gmra.mxu3 %v1051_v60 }
 0x11e   :  { %248 = vmatmul.bf16.gmra.mxu1 %v1046_v59  ;;  %268 = vmatmul.bf16.gmra.mxu3 %v1075_v2 }
 0x12e   :  { %253 = vmatmul.bf16.gmra.mxu1 %v1067_v0  ;;  %273 = vmatmul.bf16.gmra.mxu3 %v1082_v3 }
 0x17b   :  { %v239_v8 = vpop.f32.mrf.mxu1 }
 0x17c   :  { %v240_v10 = vadd.f32 %v925_v9, %v239_v8 }
 0x17e   :  { %v279_v13 = vmax.f32 %v240_v10, 0.0 }
 0x181   :  { %v259_v29 = vpop.f32.mrf.mxu3 }
 0x182   :  { %v260_v40 = vadd.f32 %v925_v9, %v259_v29 }
 0x183   :  { %v241_v11 = vpop.f32.mrf.mxu1 }
 0x184   :  { %v242_v12 = vadd.f32 %v925_v9, %v241_v11  ;;  %v287_v42 = vmax.f32 %v260_v40, 0.0  ;;  %v901_v40 = vld [vmem:[%s1212_s2 + $0x80] sm:$0xff] }
 0x186   :  { %v280_v14 = vmax.f32 %v242_v12, 0.0 }
 0x188   :  { %v295_v15 = vpack.c.bf16 %v280_v14, %v279_v13 }
 0x189   :  { %v261_v32 = vpop.f32.mrf.mxu3 }
 0x18a   :  { %376 = vmatmul.bf16.vlgmr.msrb.gmra.mxu2 %v295_v15  ;;  %v262_v41 = vadd.f32 %v925_v9, %v261_v32 }
 0x18b   :  { %v244_v16 = vpop.f32.mrf.mxu1 }
 0x18c   :  { %v245_v17 = vadd.f32 %v925_v9, %v244_v16  ;;  %v288_v43 = vmax.f32 %v262_v41, 0.0 }
 0x18e   :  { %v281_v20 = vmax.f32 %v245_v17, 0.0  ;;  %v299_v45 = vpack.c.bf16 %v288_v43, %v287_v42  ;;  %v926_v42 = vld [vmem:[%s1214_s3 + $0x1] ss:$0 sm:$0xff] }
 0x191   :  { %v264_v39 = vpop.f32.mrf.mxu3 }
 0x192   :  { %v265_v47 = vadd.f32 %v925_v9, %v264_v39  ;;  %v902_v39 = vld [vmem:[%s1212_s2 + $0x88] sm:$0xff] }
 0x193   :  { %v246_v18 = vpop.f32.mrf.mxu1 }
 0x194   :  { %v247_v19 = vadd.f32 %v925_v9, %v246_v18  ;;  %v289_v49 = vmax.f32 %v265_v47, 0.0 }
 0x196   :  { %v282_v21 = vmax.f32 %v247_v19, 0.0 }
 0x198   :  { %v296_v22 = vpack.c.bf16 %v282_v21, %v281_v20 }
 0x199   :  { %v266_v44 = vpop.f32.mrf.mxu3 }
 0x19a   :  { %381 = vmatmul.bf16.gmra.mxu2 %v296_v22  ;;  %v267_v48 = vadd.f32 %v925_v9, %v266_v44 }
 0x19b   :  { %v249_v23 = vpop.f32.mrf.mxu1 }
 0x19c   :  { %v250_v24 = vadd.f32 %v925_v9, %v249_v23  ;;  %v290_v50 = vmax.f32 %v267_v48, 0.0 }
 0x19e   :  { %v283_v27 = vmax.f32 %v250_v24, 0.0  ;;  %v300_v51 = vpack.c.bf16 %v290_v50, %v289_v49 }
 0x1a1   :  { %v269_v46 = vpop.f32.mrf.mxu3 }
 0x1a2   :  { %v270_v53 = vadd.f32 %v925_v9, %v269_v46 }
 0x1a3   :  { %v251_v25 = vpop.f32.mrf.mxu1 }
 0x1a4   :  { %v252_v26 = vadd.f32 %v925_v9, %v251_v25  ;;  %v291_v61 = vmax.f32 %v270_v53, 0.0 }
 0x1a6   :  { %v284_v28 = vmax.f32 %v252_v26, 0.0 }
 0x1a8   :  { %v297_v30 = vpack.c.bf16 %v284_v28, %v283_v27 }
 0x1a9   :  { %v271_v52 = vpop.f32.mrf.mxu3 }
 0x1aa   :  { %386 = vmatmul.bf16.gmra.mxu2 %v297_v30  ;;  %v272_v54 = vadd.f32 %v925_v9, %v271_v52 }
 0x1ab   :  { %v254_v31 = vpop.f32.mrf.mxu1 }
 0x1ac   :  { %v255_v33 = vadd.f32 %v925_v9, %v254_v31  ;;  %v292_v62 = vmax.f32 %v272_v54, 0.0 }
 0x1ae   :  { %v285_v36 = vmax.f32 %v255_v33, 0.0  ;;  %v301_v63 = vpack.c.bf16 %v292_v62, %v291_v61  ;;  %v908_v33 = vld [vmem:[%s1212_s2 + $0xb8] sm:$0xff] }
 0x1af   :  { %568 = vmatpush.bf16.msrb.mxu0 %v908_v33 }
 0x1b1   :  { %v274_v55 = vpop.f32.mrf.mxu3 }
 0x1b2   :  { %v275_v4 = vadd.f32 %v925_v9, %v274_v55 }
 0x1b3   :  { %v256_v34 = vpop.f32.mrf.mxu1 }
 0x1b4   :  { %v257_v35 = vadd.f32 %v925_v9, %v256_v34  ;;  %v293_v6 = vmax.f32 %v275_v4, 0.0  ;;  %v907_v34 = vld [vmem:[%s1212_s2 + $0xb0] sm:$0xff] }
 0x1b5   :  { %569 = vmatpush.bf16.msrb.mxu0 %v907_v34 }
 0x1b6   :  { %v286_v37 = vmax.f32 %v257_v35, 0.0  ;;  %v906_v35 = vld [vmem:[%s1212_s2 + $0xa8] sm:$0xff] }
 0x1b8   :  { %v298_v38 = vpack.c.bf16 %v286_v37, %v285_v36  ;;  %v905_v36 = vld [vmem:[%s1212_s2 + $0xa0] sm:$0xff]  ;;  %v904_v37 = vld [vmem:[%s1212_s2 + $0x98] sm:$0xff] }
 0x1b9   :  { %v276_v1 = vpop.f32.mrf.mxu3  ;;  %570 = vmatpush.bf16.msrb.mxu0 %v906_v35 }
 0x1ba   :  { %391 = vmatmul.bf16.gmra.mxu2 %v298_v38  ;;  %v277_v5 = vadd.f32 %v925_v9, %v276_v1  ;;  %v903_v38 = vld [vmem:[%s1212_s2 + $0x90] sm:$0xff] }
 0x1bc   :  { %v294_v7 = vmax.f32 %v277_v5, 0.0 }
 0x1bd   :  { %571 = vmatpush.bf16.msrb.mxu0 %v905_v36 }
 0x1be   :  { %v302_v8 = vpack.c.bf16 %v294_v7, %v293_v6 }
 0x1c1   :  { %572 = vmatpush.bf16.msrb.mxu0 %v904_v37 }
 0x1c5   :  { %573 = vmatpush.bf16.msrb.mxu0 %v903_v38 }
 0x1c9   :  { %574 = vmatpush.bf16.msrb.mxu0 %v902_v39 }
 0x1ca   :  { %396 = vmatmul.bf16.gmra.mxu2 %v299_v45 }
 0x1cd   :  { %575 = vmatpush.bf16.msrb.mxu0 %v901_v40 }
 0x1da   :  { %401 = vmatmul.bf16.gmra.mxu2 %v300_v51 }
 0x1ea   :  { %406 = vmatmul.bf16.gmra.mxu2 %v301_v63 }
 0x1fa   :  { %411 = vmatmul.bf16.gmra.mxu2 %v302_v8 }
 0x20d   :  { %v377_v10 = vpop.f32.mrf.mxu2 }
 0x215   :  { %v379_v11 = vpop.f32.mrf.mxu2 }
 0x216   :  { %v417_v12 = vpack.c.bf16 %v379_v11, %v377_v10 }
 0x21d   :  { %v382_v13 = vpop.f32.mrf.mxu2 }
 0x225   :  { %v384_v14 = vpop.f32.mrf.mxu2 }
 0x226   :  { %v418_v15 = vpack.c.bf16 %v384_v14, %v382_v13 }
 0x22d   :  { %v387_v16 = vpop.f32.mrf.mxu2 }
 0x235   :  { %v389_v17 = vpop.f32.mrf.mxu2 }
 0x236   :  { %v419_v18 = vpack.c.bf16 %v389_v17, %v387_v16 }
 0x23d   :  { %v392_v19 = vpop.f32.mrf.mxu2 }
 0x245   :  { %v394_v20 = vpop.f32.mrf.mxu2 }
 0x246   :  { %v420_v21 = vpack.c.bf16 %v394_v20, %v392_v19 }
 0x24d   :  { %v397_v22 = vpop.f32.mrf.mxu2 }
 0x255   :  { %v399_v23 = vpop.f32.mrf.mxu2 }
 0x256   :  { %v421_v32 = vpack.c.bf16 %v399_v23, %v397_v22 }
 0x25d   :  { %v402_v24 = vpop.f32.mrf.mxu2 }
 0x265   :  { %v404_v9 = vpop.f32.mrf.mxu2 }
 0x266   :  { %v422_v31 = vpack.c.bf16 %v404_v9, %v402_v24 }
 0x26d   :  { %v407_v25 = vpop.f32.mrf.mxu2 }
 0x275   :  { %v409_v26 = vpop.f32.mrf.mxu2 }
 0x276   :  { %v423_v30 = vpack.c.bf16 %v409_v26, %v407_v25 }
 0x27d   :  { %v412_v27 = vpop.f32.mrf.mxu2 }
 0x285   :  { %v414_v28 = vpop.f32.mrf.mxu2 }
 0x286   :  { %v424_v29 = vpack.c.bf16 %v414_v28, %v412_v27 }
 0x288   :  { %430 = vmatpush.bf16.msrb.mxu3 %v424_v29 }
 0x28c   :  { %431 = vmatpush.bf16.msrb.mxu3 %v423_v30 }
 0x290   :  { %432 = vmatpush.bf16.msrb.mxu3 %v422_v31 }
 0x294   :  { %433 = vmatpush.bf16.msrb.mxu3 %v421_v32 }
 0x298   :  { %434 = vmatpush.bf16.msrb.mxu3 %v420_v21 }
 0x29c   :  { %435 = vmatpush.bf16.msrb.mxu3 %v419_v18 }
 0x2a0   :  { %436 = vmatpush.bf16.msrb.mxu3 %v418_v15 }
 0x2a4   :  { %437 = vmatpush.bf16.msrb.mxu3 %v417_v12 }
 0x2a7   :  { %438 = vmatmul.bf16.vlgmr.msrb.gmra.mxu3 %v1028_v56 }
 0x2b7   :  { %443 = vmatmul.bf16.gmra.mxu3 %v1034_v57 }
 0x2c7   :  { %448 = vmatmul.bf16.gmra.mxu3 %v1046_v59 }
 0x2d7   :  { %453 = vmatmul.bf16.gmra.mxu3 %v1067_v0 }
 0x2e7   :  { %458 = vmatmul.bf16.gmra.mxu3 %v1040_v58 }
 0x2f7   :  { %463 = vmatmul.bf16.gmra.mxu3 %v1051_v60 }
 0x307   :  { %468 = vmatmul.bf16.gmra.mxu3 %v1075_v2 }
 0x317   :  { %473 = vmatmul.bf16.gmra.mxu3 %v1082_v3 }
 0x32a   :  { %v439_v41 = vpop.f32.mrf.mxu3 }
 0x32b   :  { %v440_v43 = vadd.f32 %v926_v42, %v439_v41 }
 0x32d   :  { %v479_v46 = vmax.f32 %v440_v43, 0.0 }
 0x332   :  { %v441_v44 = vpop.f32.mrf.mxu3 }
 0x333   :  { %v442_v45 = vadd.f32 %v926_v42, %v441_v44 }
 0x335   :  { %v480_v47 = vmax.f32 %v442_v45, 0.0 }
 0x337   :  { %v495_v48 = vpack.c.bf16 %v480_v47, %v479_v46 }
 0x339   :  { %576 = vmatmul.bf16.vlgmr.msrb.gmra.mxu0 %v495_v48 }
 0x33a   :  { %v444_v49 = vpop.f32.mrf.mxu3 }
 0x33b   :  { %v445_v50 = vadd.f32 %v926_v42, %v444_v49 }
 0x33d   :  { %v481_v53 = vmax.f32 %v445_v50, 0.0 }
 0x342   :  { %v446_v51 = vpop.f32.mrf.mxu3 }
 0x343   :  { %v447_v52 = vadd.f32 %v926_v42, %v446_v51 }
 0x345   :  { %v482_v54 = vmax.f32 %v447_v52, 0.0 }
 0x347   :  { %v496_v55 = vpack.c.bf16 %v482_v54, %v481_v53 }
 0x349   :  { %581 = vmatmul.bf16.gmra.mxu0 %v496_v55 }
 0x34a   :  { %v449_v61 = vpop.f32.mrf.mxu3 }
 0x34b   :  { %v450_v62 = vadd.f32 %v926_v42, %v449_v61 }
 0x34d   :  { %v483_v4 = vmax.f32 %v450_v62, 0.0 }
 0x352   :  { %v451_v63 = vpop.f32.mrf.mxu3 }
 0x353   :  { %v452_v1 = vadd.f32 %v926_v42, %v451_v63 }
 0x355   :  { %v484_v5 = vmax.f32 %v452_v1, 0.0 }
 0x357   :  { %v497_v6 = vpack.c.bf16 %v484_v5, %v483_v4 }
 0x359   :  { %586 = vmatmul.bf16.gmra.mxu0 %v497_v6 }
 0x35a   :  { %v454_v7 = vpop.f32.mrf.mxu3 }
 0x35b   :  { %v455_v8 = vadd.f32 %v926_v42, %v454_v7 }
 0x35d   :  { %v485_v12 = vmax.f32 %v455_v8, 0.0 }
 0x362   :  { %v456_v10 = vpop.f32.mrf.mxu3 }
 0x363   :  { %v457_v11 = vadd.f32 %v926_v42, %v456_v10 }
 0x365   :  { %v486_v13 = vmax.f32 %v457_v11, 0.0  ;;  %v1146_v11 = vld [vmem:[%s1214_s3 + $0x2] ss:$0 sm:$0xff] }
 0x367   :  { %v498_v14 = vpack.c.bf16 %v486_v13, %v485_v12 }
 0x369   :  { %591 = vmatmul.bf16.gmra.mxu0 %v498_v14 }
 0x36a   :  { %v459_v15 = vpop.f32.mrf.mxu3 }
 0x36b   :  { %v460_v16 = vadd.f32 %v926_v42, %v459_v15 }
 0x36d   :  { %v487_v19 = vmax.f32 %v460_v16, 0.0 }
 0x372   :  { %v461_v17 = vpop.f32.mrf.mxu3 }
 0x373   :  { %v462_v18 = vadd.f32 %v926_v42, %v461_v17 }
 0x375   :  { %v488_v20 = vmax.f32 %v462_v18, 0.0 }
 0x377   :  { %v499_v21 = vpack.c.bf16 %v488_v20, %v487_v19 }
 0x379   :  { %596 = vmatmul.bf16.gmra.mxu0 %v499_v21 }
 0x37a   :  { %v464_v22 = vpop.f32.mrf.mxu3 }
 0x37b   :  { %v465_v23 = vadd.f32 %v926_v42, %v464_v22 }
 0x37d   :  { %v489_v25 = vmax.f32 %v465_v23, 0.0 }
 0x382   :  { %v466_v24 = vpop.f32.mrf.mxu3 }
 0x383   :  { %v467_v9 = vadd.f32 %v926_v42, %v466_v24 }
 0x385   :  { %v490_v26 = vmax.f32 %v467_v9, 0.0 }
 0x387   :  { %v500_v27 = vpack.c.bf16 %v490_v26, %v489_v25 }
 0x389   :  { %601 = vmatmul.bf16.gmra.mxu0 %v500_v27 }
 0x38a   :  { %v469_v28 = vpop.f32.mrf.mxu3 }
 0x38b   :  { %v470_v29 = vadd.f32 %v926_v42, %v469_v28 }
 0x38d   :  { %v491_v32 = vmax.f32 %v470_v29, 0.0 }
 0x392   :  { %v471_v30 = vpop.f32.mrf.mxu3 }
 0x393   :  { %v472_v31 = vadd.f32 %v926_v42, %v471_v30 }
 0x395   :  { %v492_v33 = vmax.f32 %v472_v31, 0.0 }
 0x397   :  { %v501_v34 = vpack.c.bf16 %v492_v33, %v491_v32 }
 0x399   :  { %606 = vmatmul.bf16.gmra.mxu0 %v501_v34 }
 0x39a   :  { %v474_v35 = vpop.f32.mrf.mxu3 }
 0x39b   :  { %v475_v36 = vadd.f32 %v926_v42, %v474_v35 }
 0x39d   :  { %v493_v39 = vmax.f32 %v475_v36, 0.0 }
 0x3a2   :  { %v476_v37 = vpop.f32.mrf.mxu3 }
 0x3a3   :  { %v477_v38 = vadd.f32 %v926_v42, %v476_v37 }
 0x3a5   :  { %v494_v40 = vmax.f32 %v477_v38, 0.0 }
 0x3a7   :  { %v502_v41 = vpack.c.bf16 %v494_v40, %v493_v39 }
 0x3a9   :  { %611 = vmatmul.bf16.gmra.mxu0 %v502_v41 }
 0x3b6   :  { %v577_v43 = vpop.f32.mrf.mxu0 }
 0x3be   :  { %v579_v44 = vpop.f32.mrf.mxu0 }
 0x3bf   :  { %v617_v45 = vpack.c.bf16 %v579_v44, %v577_v43 }
 0x3c6   :  { %v582_v46 = vpop.f32.mrf.mxu0 }
 0x3ce   :  { %v584_v47 = vpop.f32.mrf.mxu0 }
 0x3cf   :  { %v618_v48 = vpack.c.bf16 %v584_v47, %v582_v46 }
 0x3d6   :  { %v587_v49 = vpop.f32.mrf.mxu0 }
 0x3de   :  { %v589_v50 = vpop.f32.mrf.mxu0 }
 0x3df   :  { %v619_v51 = vpack.c.bf16 %v589_v50, %v587_v49 }
 0x3e6   :  { %v592_v52 = vpop.f32.mrf.mxu0 }
 0x3ee   :  { %v594_v53 = vpop.f32.mrf.mxu0 }
 0x3ef   :  { %v620_v54 = vpack.c.bf16 %v594_v53, %v592_v52 }
 0x3f6   :  { %v597_v55 = vpop.f32.mrf.mxu0 }
 0x3fe   :  { %v599_v61 = vpop.f32.mrf.mxu0 }
 0x3ff   :  { %v621_v10 = vpack.c.bf16 %v599_v61, %v597_v55 }
 0x406   :  { %v602_v62 = vpop.f32.mrf.mxu0 }
 0x40e   :  { %v604_v42 = vpop.f32.mrf.mxu0 }
 0x40f   :  { %v622_v8 = vpack.c.bf16 %v604_v42, %v602_v62 }
 0x416   :  { %v607_v63 = vpop.f32.mrf.mxu0 }
 0x41e   :  { %v609_v1 = vpop.f32.mrf.mxu0 }
 0x41f   :  { %v623_v7 = vpack.c.bf16 %v609_v1, %v607_v63 }
 0x426   :  { %v612_v4 = vpop.f32.mrf.mxu0 }
 0x42e   :  { %v614_v5 = vpop.f32.mrf.mxu0 }
 0x42f   :  { %v624_v6 = vpack.c.bf16 %v614_v5, %v612_v4 }
 0x431   :  { %630 = vmatpush.bf16.msrb.mxu1 %v624_v6 }
 0x435   :  { %631 = vmatpush.bf16.msrb.mxu1 %v623_v7 }
 0x439   :  { %632 = vmatpush.bf16.msrb.mxu1 %v622_v8 }
 0x43d   :  { %633 = vmatpush.bf16.msrb.mxu1 %v621_v10 }
 0x441   :  { %634 = vmatpush.bf16.msrb.mxu1 %v620_v54 }
 0x445   :  { %635 = vmatpush.bf16.msrb.mxu1 %v619_v51 }
 0x449   :  { %636 = vmatpush.bf16.msrb.mxu1 %v618_v48 }
 0x44d   :  { %637 = vmatpush.bf16.msrb.mxu1 %v617_v45 }
 0x450   :  { %638 = vmatmul.bf16.vlgmr.msrb.gmra.mxu1 %v1028_v56 }
 0x460   :  { %643 = vmatmul.bf16.gmra.mxu1 %v1034_v57 }
 0x470   :  { %648 = vmatmul.bf16.gmra.mxu1 %v1046_v59 }
 0x480   :  { %653 = vmatmul.bf16.gmra.mxu1 %v1067_v0 }
 0x490   :  { %658 = vmatmul.bf16.gmra.mxu1 %v1040_v58 }
 0x4a0   :  { %663 = vmatmul.bf16.gmra.mxu1 %v1051_v60 }
 0x4b0   :  { %668 = vmatmul.bf16.gmra.mxu1 %v1075_v2 }
 0x4c0   :  { %673 = vmatmul.bf16.gmra.mxu1 %v1082_v3 }
 0x4cd   :  { %v639_v56 = vpop.f32.mrf.mxu1 }
 0x4ce   :  { %v640_v57 = vadd.f32 %v1146_v11, %v639_v56 }
 0x4d0   :  { %v679_v12 = vmax.f32 %v640_v57, 0.0 }
 0x4d2   :  { %695 = vst [vmem:[%s1216_s4] sm:$0xff] %v679_v12 }
 0x4d5   :  { %v641_v58 = vpop.f32.mrf.mxu1 }
 0x4d6   :  { %v642_v59 = vadd.f32 %v1146_v11, %v641_v58 }
 0x4d8   :  { %v680_v60 = vmax.f32 %v642_v59, 0.0 }
 0x4da   :  { %696 = vst [vmem:[%s1216_s4 + $0x8] sm:$0xff] %v680_v60 }
 0x4dd   :  { %v644_v0 = vpop.f32.mrf.mxu1 }
 0x4de   :  { %v645_v2 = vadd.f32 %v1146_v11, %v644_v0 }
 0x4e0   :  { %v681_v3 = vmax.f32 %v645_v2, 0.0 }
 0x4e2   :  { %697 = vst [vmem:[%s1216_s4 + $0x10] sm:$0xff] %v681_v3 }
 0x4e5   :  { %v646_v13 = vpop.f32.mrf.mxu1 }
 0x4e6   :  { %v647_v14 = vadd.f32 %v1146_v11, %v646_v13 }
 0x4e8   :  { %v682_v15 = vmax.f32 %v647_v14, 0.0 }
 0x4ea   :  { %698 = vst [vmem:[%s1216_s4 + $0x18] sm:$0xff] %v682_v15 }
 0x4ed   :  { %v649_v16 = vpop.f32.mrf.mxu1 }
 0x4ee   :  { %v650_v17 = vadd.f32 %v1146_v11, %v649_v16 }
 0x4f0   :  { %v683_v18 = vmax.f32 %v650_v17, 0.0 }
 0x4f2   :  { %699 = vst [vmem:[%s1216_s4 + $0x20] sm:$0xff] %v683_v18 }
 0x4f5   :  { %v651_v19 = vpop.f32.mrf.mxu1 }
 0x4f6   :  { %v652_v20 = vadd.f32 %v1146_v11, %v651_v19 }
 0x4f8   :  { %v684_v21 = vmax.f32 %v652_v20, 0.0 }
 0x4fa   :  { %700 = vst [vmem:[%s1216_s4 + $0x28] sm:$0xff] %v684_v21 }
 0x4fd   :  { %v654_v22 = vpop.f32.mrf.mxu1 }
 0x4fe   :  { %v655_v23 = vadd.f32 %v1146_v11, %v654_v22 }
 0x500   :  { %v685_v24 = vmax.f32 %v655_v23, 0.0 }
 0x502   :  { %701 = vst [vmem:[%s1216_s4 + $0x30] sm:$0xff] %v685_v24 }
 0x505   :  { %v656_v9 = vpop.f32.mrf.mxu1 }
 0x506   :  { %v657_v25 = vadd.f32 %v1146_v11, %v656_v9 }
 0x508   :  { %v686_v26 = vmax.f32 %v657_v25, 0.0 }
 0x50a   :  { %702 = vst [vmem:[%s1216_s4 + $0x38] sm:$0xff] %v686_v26 }
 0x50d   :  { %v659_v27 = vpop.f32.mrf.mxu1 }
 0x50e   :  { %v660_v28 = vadd.f32 %v1146_v11, %v659_v27 }
 0x510   :  { %v687_v29 = vmax.f32 %v660_v28, 0.0 }
 0x512   :  { %703 = vst [vmem:[%s1216_s4 + $0x40] sm:$0xff] %v687_v29 }
 0x515   :  { %v661_v30 = vpop.f32.mrf.mxu1 }
 0x516   :  { %v662_v31 = vadd.f32 %v1146_v11, %v661_v30 }
 0x518   :  { %v688_v32 = vmax.f32 %v662_v31, 0.0 }
 0x51a   :  { %704 = vst [vmem:[%s1216_s4 + $0x48] sm:$0xff] %v688_v32 }
 0x51d   :  { %v664_v33 = vpop.f32.mrf.mxu1 }
 0x51e   :  { %v665_v34 = vadd.f32 %v1146_v11, %v664_v33 }
 0x520   :  { %v689_v35 = vmax.f32 %v665_v34, 0.0 }
 0x522   :  { %705 = vst [vmem:[%s1216_s4 + $0x50] sm:$0xff] %v689_v35 }
 0x525   :  { %v666_v36 = vpop.f32.mrf.mxu1 }
 0x526   :  { %v667_v37 = vadd.f32 %v1146_v11, %v666_v36 }
 0x528   :  { %v690_v38 = vmax.f32 %v667_v37, 0.0 }
 0x52a   :  { %706 = vst [vmem:[%s1216_s4 + $0x58] sm:$0xff] %v690_v38 }
 0x52d   :  { %v669_v39 = vpop.f32.mrf.mxu1 }
 0x52e   :  { %v670_v40 = vadd.f32 %v1146_v11, %v669_v39 }
 0x530   :  { %v691_v41 = vmax.f32 %v670_v40, 0.0 }
 0x532   :  { %707 = vst [vmem:[%s1216_s4 + $0x60] sm:$0xff] %v691_v41 }
 0x535   :  { %v671_v43 = vpop.f32.mrf.mxu1 }
 0x536   :  { %v672_v44 = vadd.f32 %v1146_v11, %v671_v43 }
 0x538   :  { %v692_v45 = vmax.f32 %v672_v44, 0.0 }
 0x53a   :  { %708 = vst [vmem:[%s1216_s4 + $0x68] sm:$0xff] %v692_v45 }
 0x53d   :  { %v674_v46 = vpop.f32.mrf.mxu1 }
 0x53e   :  { %v675_v47 = vadd.f32 %v1146_v11, %v674_v46 }
 0x540   :  { %v693_v48 = vmax.f32 %v675_v47, 0.0 }
 0x542   :  { %709 = vst [vmem:[%s1216_s4 + $0x70] sm:$0xff] %v693_v48 }
 0x545   :  { %v676_v49 = vpop.f32.mrf.mxu1 }
 0x546   :  { %v677_v50 = vadd.f32 %v1146_v11, %v676_v49 }
 0x548   :  { %v694_v51 = vmax.f32 %v677_v50, 0.0 }
 0x54a   :  { %710 = vst [vmem:[%s1216_s4 + $0x78] sm:$0xff] %v694_v51 }

</bundles_post_ra>
